<compile_context>
chip_gen: v7x
topology: tpu7x:2x2x1
jax: 0.10.0
libtpu: 0.0.40
codegen_flags: <defaults>
</compile_context>

<pallas_src>
import jax
import jax.numpy as jnp
from jax.experimental import pallas as pl
from jax.experimental.pallas import tpu as pltpu


_TARGET_BLOCK_BYTES = 2 << 20   # ~2 MiB per x/out block (review: 2-4 MiB sweet spot)
_VMEM_LIMIT_BYTES = 40 << 20    # explicit: v5e default scoped limit is only 16 MiB


def _build_pe_table(d_model: int, max_seq_len: int) -> jnp.ndarray:
    """Exact vectorized replica of the module's double loop. Shape (max_seq_len, d_model)."""
    pos = jnp.arange(max_seq_len, dtype=jnp.float32)[:, None]             # (L, 1)
    i_even = jnp.arange(0, d_model, 2, dtype=jnp.float32)[None, :]        # (1, D/2)
    i_odd = i_even + 1.0                                                  # (1, D/2)
    sin_part = jnp.sin(pos / jnp.power(10000.0, 2.0 * i_even / d_model))  # even cols
    cos_part = jnp.cos(pos / jnp.power(10000.0, 2.0 * i_odd / d_model))   # odd cols
    pe = jnp.zeros((max_seq_len, d_model), dtype=jnp.float32)
    pe = pe.at[:, 0::2].set(sin_part)
    pe = pe.at[:, 1::2].set(cos_part)
    return pe


def _add_pe_kernel(x_ref, pe_ref, o_ref):
    # x block: (tb, rows, cols); pe block: (rows, cols) in f32, broadcast over
    # the leading batch-pack dim.  Accumulate in f32, round once on the store.
    o_ref[...] = (x_ref[...].astype(jnp.float32) + pe_ref[...]).astype(o_ref.dtype)


def _sublane_packing(dtype) -> int:
    """Rows packed per 32-bit sublane (1 for f32, 2 for bf16, 4 for int8)."""
    return max(1, 4 // jnp.dtype(dtype).itemsize)


def _pick_tiles(n_rows, row_bytes, batch, align, target_bytes):
    """Pick (tile_rows, tile_batch) so the x block is ~target_bytes.

    tile_rows is either the full row extent (always a legal block) or a
    multiple of `align` (= 8 * sublane packing) so stores stay unmasked.
    """
    if n_rows * row_bytes <= target_bytes:
        tr = n_rows
    else:
        tr = max(align, (target_bytes // row_bytes) // align * align)
        tr = min(tr, n_rows)
    tb = max(1, target_bytes // max(1, tr * row_bytes))
    tb = min(tb, batch)
    return tr, tb


def positional_encoding(x: jnp.ndarray, pe: jnp.ndarray, *,
                        target_block_bytes: int = _TARGET_BLOCK_BYTES,
                        donate: bool = False) -> jnp.ndarray:
    """x: (B, S, D); pe: (max_seq_len, D) f32. Returns x + pe[:S] broadcast over batch."""
    B, S, D = x.shape
    L, Dp = pe.shape
    if Dp != D:
        raise ValueError(f"pe d_model {Dp} != x d_model {D}")
    if S > L:
        raise ValueError(f"sequence length {S} exceeds max_seq_len {L}")

    pe_slice = pe[:S, :].astype(jnp.float32)   # static slice (forward's pe[:, :x.size(1)])
    itemsize = jnp.dtype(x.dtype).itemsize
    align = 8 * _sublane_packing(x.dtype)
    total = S * D

    cost = pl.CostEstimate(
        flops=B * total,
        transcendentals=0,
        bytes_accessed=2 * B * total * itemsize + total * 4)

    aliases = {0: 0} if donate else {}

    if total % 128 == 0:
        # Lane-dense main path: view each batch element as an (R, 128) slab.
        R = total // 128
        x2 = x.reshape(B, R, 128)
        pe2 = pe_slice.reshape(R, 128)

        tr, tb = _pick_tiles(R, 128 * itemsize, B, align, target_block_bytes)
        grid = (pl.cdiv(R, tr), pl.cdiv(B, tb))   # row tile outer, batch inner (fast)

        out = pl.pallas_call(
            _add_pe_kernel,
            out_shape=jax.ShapeDtypeStruct((B, R, 128), x.dtype),
            grid_spec=pltpu.PrefetchScalarGridSpec(
                num_scalar_prefetch=0,
                grid=grid,
                in_specs=[
                    pl.BlockSpec((tb, tr, 128), lambda r, b: (b, r, 0)),
                    # pe index depends only on the row tile -> DMA skipped across batch.
                    pl.BlockSpec((tr, 128), lambda r, b: (r, 0)),
                ],
                out_specs=pl.BlockSpec((tb, tr, 128), lambda r, b: (b, r, 0)),
            ),
            compiler_params=pltpu.CompilerParams(
                dimension_semantics=("parallel", "parallel"),
                vmem_limit_bytes=_VMEM_LIMIT_BYTES),
            cost_estimate=cost,
            input_output_aliases=aliases,
        )(x2, pe2)
        return out.reshape(B, S, D)

    # Fallback for S*D not a multiple of 128: keep (B, S, D), tile the S axis.
    # D is the full last dim so the block is always legal; only the D<128 lane
    # tail is masked, and VMEM stays bounded / double-buffered for large S.
    tS, tb = _pick_tiles(S, D * itemsize, B, align, target_block_bytes)
    grid = (pl.cdiv(S, tS), pl.cdiv(B, tb))

    out = pl.pallas_call(
        _add_pe_kernel,
        out_shape=jax.ShapeDtypeStruct((B, S, D), x.dtype),
        grid_spec=pltpu.PrefetchScalarGridSpec(
            num_scalar_prefetch=0,
            grid=grid,
            in_specs=[
                pl.BlockSpec((tb, tS, D), lambda s, b: (b, s, 0)),
                pl.BlockSpec((tS, D), lambda s, b: (s, 0)),
            ],
            out_specs=pl.BlockSpec((tb, tS, D), lambda s, b: (b, s, 0)),
        ),
        compiler_params=pltpu.CompilerParams(
            dimension_semantics=("parallel", "parallel"),
            vmem_limit_bytes=_VMEM_LIMIT_BYTES),
        cost_estimate=cost,
        input_output_aliases=aliases,
    )(x, pe_slice)
    return out


if __name__ == "__main__":
    key = jax.random.PRNGKey(0)

    checks = [
        # (B, S, D, max_seq_len, dtype, target_block_bytes, donate)
        (2, 10, 512, 512, jnp.float32, _TARGET_BLOCK_BYTES, True),   # module shape (d_model=512, len 10)
        (2, 8, 32, 16, jnp.float32, _TARGET_BLOCK_BYTES, False),     # tiny D=32 -> batch-packed blocks
        (2, 24, 64, 32, jnp.float32, 4096, False),                   # forced row tiling + partial tail
        (2, 16, 64, 32, jnp.bfloat16, _TARGET_BLOCK_BYTES, False),   # bf16: f32 accumulate, one rounding
        (2, 64, 64, 64, jnp.bfloat16, 2048, False),                  # bf16 forced tiling, 16-row alignment
        (2, 3, 24, 8, jnp.float32, _TARGET_BLOCK_BYTES, False),      # S*D not /128 -> fallback path
        (2, 20, 24, 32, jnp.float32, 768, False),                    # fallback with tiled S + partial tail
    ]
    for idx, (B, S, D, L, dtype, tgt, donate) in enumerate(checks):
        k = jax.random.fold_in(key, idx)
        x = jax.random.normal(k, (B, S, D), dtype=jnp.float32).astype(dtype)
        pe = _build_pe_table(d_model=D, max_seq_len=L)

        # Reference in the same precision scheme (f32 add, cast on store).
        ref = (x.astype(jnp.float32) + pe[None, :S, :]).astype(dtype)

        out = jax.block_until_ready(
            positional_encoding(x, pe, target_block_bytes=tgt, donate=donate))

        assert out.shape == (B, S, D)
        assert out.dtype == dtype
        tol = 1e-6 if dtype == jnp.float32 else 1e-2
        assert jnp.allclose(out.astype(jnp.float32), ref.astype(jnp.float32),
                            atol=tol), f"mismatch vs reference for shape {(B, S, D)} {dtype}"

    print("KERNEL_OK")
</pallas_src>

<mosaic_0001>
module attributes {stable_mosaic.version = 11 : i64} {
  func.func @_add_pe_kernel(%arg0: i32, %arg1: i32, %arg2: memref<2x40x128xf32, #tpu.memory_space<vmem>>, %arg3: memref<40x128xf32, #tpu.memory_space<vmem>>, %arg4: memref<2x40x128xf32, #tpu.memory_space<vmem>>) attributes {dimension_semantics = [#tpu.dimension_semantics<parallel>, #tpu.dimension_semantics<parallel>], iteration_bounds = array<i64: 1, 1>, scalar_prefetch = 0 : i64, scratch_operands = 0 : i64, tpu.core_type = #tpu.core_type<tc>, window_params = [{transform_indices = @transform_0, window_bounds = array<i64: 2, 40, 128>}, {transform_indices = @transform_1, window_bounds = array<i64: 40, 128>}, {transform_indices = @transform_2, window_bounds = array<i64: 2, 40, 128>}]} {
    %c0 = arith.constant 0 : index
    %c0_0 = arith.constant 0 : index
    %c0_1 = arith.constant 0 : index
    %0 = vector.load %arg2[%c0, %c0_0, %c0_1] : memref<2x40x128xf32, #tpu.memory_space<vmem>>, vector<2x40x128xf32>
    %c0_2 = arith.constant 0 : index
    %c0_3 = arith.constant 0 : index
    %1 = vector.load %arg3[%c0_2, %c0_3] : memref<40x128xf32, #tpu.memory_space<vmem>>, vector<40x128xf32>
    %2 = vector.shape_cast %1 : vector<40x128xf32> to vector<1x40x128xf32>
    %3 = vector.broadcast %2 : vector<1x40x128xf32> to vector<2x40x128xf32>
    %4 = arith.addf %0, %3 : vector<2x40x128xf32>
    %c0_4 = arith.constant 0 : index
    %c0_5 = arith.constant 0 : index
    %c0_6 = arith.constant 0 : index
    %5 = vector.load %arg4[%c0_4, %c0_5, %c0_6] : memref<2x40x128xf32, #tpu.memory_space<vmem>>, vector<2x40x128xf32>
    tpu.vector_store %arg4[%c0_4, %c0_5, %c0_6], %4 {strides = array<i32>} : memref<2x40x128xf32, #tpu.memory_space<vmem>>, vector<2x40x128xf32>,
    return
  }
  func.func @transform_0(%arg0: i32, %arg1: i32) -> (i32, i32, i32) {
    %c0_i32 = arith.constant 0 : i32
    %c0_i32_0 = arith.constant 0 : i32
    return %arg1, %arg0, %c0_i32 : i32, i32, i32
  }
  func.func @transform_1(%arg0: i32, %arg1: i32) -> (i32, i32) {
    %c0_i32 = arith.constant 0 : i32
    %c0_i32_0 = arith.constant 0 : i32
    return %arg0, %c0_i32 : i32, i32
  }
  func.func @transform_2(%arg0: i32, %arg1: i32) -> (i32, i32, i32) {
    %c0_i32 = arith.constant 0 : i32
    %c0_i32_0 = arith.constant 0 : i32
    return %arg1, %arg0, %c0_i32 : i32, i32, i32
  }
}

</mosaic_0001>

<bundles_post_ra>
// kernel: tpu_custom_call.1
= control target key start
LH: loop header
LB: loop body
LE: loop exit
PB: predicated region body
PF: predicated region fallthrough
CT: control target
= control target key end

     0   :  { %7 = vsyncpa [#allocation3], 0  ;;  %s194_s0 = inlined_call_operand.hbm [shape: f32[2,40,128], index: 0, kind: input, shape index: {}, may-alias: {0,2}]   ;;  %s195_s1 = inlined_call_operand.vmem [shape: f32[40,128], index: 1, kind: input, shape index: {}]   ;;  %s196_s2 = inlined_call_operand.hbm [shape: f32[2,40,128], index: 2, kind: output, shape index: {}, may-alias: {0,2}]  }
   0x1   :  { %8 = vsyncpa [#allocation4], 0  ;;  %s130_s9 = smov [#allocation2]   ;;  %s82_s13 = scalar_lea.hbm %s194_s0, 1280 }
   0x2   :  { %s14_s10 = sshll.u32 %s130_s9, 4  ;;  %p83_p0 = scmp.ne.s32.totalorder %s194_s0, %s82_s13  ;;  %s15_s10 = int_to_ptr.vmem [resolvable:$true] %s14_s10 }
   0x3   :  { %p86_p1 = scmp.lt.u32.totalorder %s82_s13, %s194_s0 }
   0x5   :  { %p88_p2 = pnand %p86_p1, %p83_p0 }
   0x7   :  { %91 = shalt.err (!%p88_p2)
}
   0x8   :  { %s92_s18 = scalar_lea.vmem %s15_s10, 1280  ;;  %p97_p4 = scmp.lt.s32.totalorder %s15_s10, %s15_s10 }
   0x9   :  { %p93_p3 = scmp.ne.s32.totalorder %s15_s10, %s92_s18  ;;  %p98_p5 = scmp.lt.s32.totalorder %s92_s18, %s92_s18 }
   0xb   :  { %p99_p6 = por %p98_p5, %p97_p4 }
   0xd   :  { %p100_p7 = pnand %p99_p6, %p93_p3 }
   0xf   :  { %103 = shalt.err (!%p100_p7)
}
  0x10   :  { %s131_s19 = smov 128   ;;  %s132_s20 = smov 8  }
  0x11   :  { %20 = dma.hbm_to_vmem [thread:$0]  %s194_s0, 1280, %s15_s10, [#allocation3], %s131_s19, %s131_s19, %s132_s20  }
  0x12   :  { %126 = dma.done.wait [#allocation3], 1280  }
  0x13   :  { %127 = vsyncadd [#allocation3], 4294966016  ;;  %v26_v0 = vld [vmem:[#allocation2] sm:$0xff]  ;;  %v27_v2 = vld [vmem:[#allocation2 + $0x8] sm:$0xff]  ;;  %s133_s30 = smov [#allocation5]  }
  0x14   :  { %v36_v1 = vld [vmem:[%s195_s1] sm:$0xff]  ;;  %v37_v4 = vld [vmem:[%s195_s1 + $0x8] sm:$0xff]  ;;  %v28_v5 = vld [vmem:[#allocation2 + $0x10] sm:$0xff]  ;;  %s66_s3 = sshll.u32 %s133_s30, 4  ;;  %s67_s3 = int_to_ptr.vmem [resolvable:$true] %s66_s3 }
  0x15   :  { %v41_v3 = vadd.f32 %v36_v1, %v26_v0  ;;  %v38_v6 = vld [vmem:[%s195_s1 + $0x10] sm:$0xff]  ;;  %v42_v7 = vadd.f32 %v37_v4, %v27_v2  ;;  %v29_v9 = vld [vmem:[#allocation2 + $0x18] sm:$0xff]  ;;  %v30_v11 = vld [vmem:[#allocation2 + $0x20] sm:$0xff]  ;;  %p109_p9 = scmp.lt.s32.totalorder %s67_s3, %s67_s3 }
  0x16   :  { %v43_v8 = vadd.f32 %v38_v6, %v28_v5  ;;  %v39_v10 = vld [vmem:[%s195_s1 + $0x18] sm:$0xff]  ;;  %v40_v13 = vld [vmem:[%s195_s1 + $0x20] sm:$0xff]  ;;  %v31_v14 = vld [vmem:[#allocation2 + $0x28] sm:$0xff]  ;;  %s104_s1 = scalar_lea.vmem %s67_s3, 1280 }
  0x17   :  { %51 = vst [vmem:[#allocation5] sm:$0xff] %v41_v3  ;;  %v44_v12 = vadd.f32 %v39_v10, %v29_v9  ;;  %v32_v15 = vld [vmem:[#allocation2 + $0x30] sm:$0xff]  ;;  %52 = vst [vmem:[#allocation5 + $0x8] sm:$0xff] %v42_v7  ;;  %v45_v16 = vadd.f32 %v40_v13, %v30_v11  ;;  %v46_v17 = vadd.f32 %v36_v1, %v31_v14  ;;  %v33_v19 = vld [vmem:[#allocation2 + $0x38] sm:$0xff]  ;;  %p105_p8 = scmp.ne.s32.totalorder %s67_s3, %s104_s1  ;;  %p110_p10 = scmp.lt.s32.totalorder %s104_s1, %s104_s1 }
  0x18   :  { %53 = vst [vmem:[#allocation5 + $0x10] sm:$0xff] %v43_v8  ;;  %v47_v18 = vadd.f32 %v37_v4, %v32_v15  ;;  %v34_v20 = vld [vmem:[#allocation2 + $0x40] sm:$0xff]  ;;  %v35_v21 = vld [vmem:[#allocation2 + $0x48] sm:$0xff]  ;;  %v48_v22 = vadd.f32 %v38_v6, %v33_v19 }
  0x19   :  { %54 = vst [vmem:[#allocation5 + $0x18] sm:$0xff] %v44_v12  ;;  %v49_v23 = vadd.f32 %v39_v10, %v34_v20  ;;  %v50_v24 = vadd.f32 %v40_v13, %v35_v21  ;;  %55 = vst [vmem:[#allocation5 + $0x20] sm:$0xff] %v45_v16  ;;  %p111_p11 = por %p110_p10, %p109_p9 }
  0x1a   :  { %56 = vst [vmem:[#allocation5 + $0x28] sm:$0xff] %v46_v17  ;;  %57 = vst [vmem:[#allocation5 + $0x30] sm:$0xff] %v47_v18 }
  0x1b   :  { %58 = vst [vmem:[#allocation5 + $0x38] sm:$0xff] %v48_v22  ;;  %59 = vst [vmem:[#allocation5 + $0x40] sm:$0xff] %v49_v23  ;;  %p112_p12 = pnand %p111_p11, %p105_p8 }
  0x1c   :  { %60 = vst [vmem:[#allocation5 + $0x48] sm:$0xff] %v50_v24 }
  0x1d   :  { %115 = shalt.err (!%p112_p12)
}
  0x1e   :  { %s116_s8 = scalar_lea.hbm %s196_s2, 1280 }
  0x1f   :  { %p117_p13 = scmp.ne.s32.totalorder %s196_s2, %s116_s8  ;;  %p120_p0 = scmp.lt.u32.totalorder %s116_s8, %s196_s2 }
  0x21   :  { %p122_p1 = pnand %p120_p0, %p117_p13 }
  0x23   :  { %125 = shalt.err (!%p122_p1)
}
  0x24   :  { %72 = dma.vmem_to_hbm [thread:$0]  %s67_s3, 1280, %s196_s2, [#allocation4], %s131_s19, %s131_s19, %s132_s20  }
  0x25   :  { %128 = dma.done.wait [#allocation4], 1280  }
  0x26   :  { %129 = vsyncadd [#allocation4], 4294966016 }
  0x27   :  { %76 = vsyncpa [#allocation3], 1 }
  0x28   :  { %77 = vsyncpa [#allocation4], 1 }

</bundles_post_ra>
